<compile_context>
chip_gen: v7x
topology: tpu7x:2x2x1
jax: 0.10.0
libtpu: 0.0.40
codegen_flags: <defaults>
</compile_context>

<pallas_src>
import jax
import jax.numpy as jnp
from jax.experimental import pallas as pl
from jax.experimental.pallas import tpu as pltpu

NUM_INPUTS = 16
NUM_HIDDENS = 32
NUM_OUTPUTS = 4
BATCH = 8
PAD = 128  # lane width


def _mlp_kernel(x_ref, p_ref, o_ref):
    # Layer 1: h = relu(x_aug @ W1aug).  b1 is row NUM_INPUTS of W1aug (picked
    # up by the ones column of x_aug); that row also has a 1.0 at column
    # NUM_HIDDENS so h carries a constant 1 for the second layer's bias.
    h = jnp.dot(x_ref[...], p_ref[0], preferred_element_type=jnp.float32)
    h = jnp.maximum(h, 0.0)
    # Layer 2: y = sigmoid(h @ W2aug); b2 is row NUM_HIDDENS of W2aug.
    y = jnp.dot(h, p_ref[1], preferred_element_type=jnp.float32)
    # exp goes to the otherwise-idle EUP slot; store is a full-lane (B,128) vst.
    o_ref[...] = jax.nn.sigmoid(y)


def pack_params(w1, b1, w2, b2):
    """Fold biases into padded weight slabs. Done once, outside the hot path.

    w1: (NUM_INPUTS, NUM_HIDDENS), b1: (NUM_HIDDENS,)
    w2: (NUM_HIDDENS, NUM_OUTPUTS), b2: (NUM_OUTPUTS,)
    returns params: (2, PAD, PAD) float32
    """
    w1aug = jnp.zeros((PAD, PAD), jnp.float32)
    w1aug = w1aug.at[:NUM_INPUTS, :NUM_HIDDENS].set(w1)
    w1aug = w1aug.at[NUM_INPUTS, :NUM_HIDDENS].set(b1)
    w1aug = w1aug.at[NUM_INPUTS, NUM_HIDDENS].set(1.0)  # forwards the constant 1
    w2aug = jnp.zeros((PAD, PAD), jnp.float32)
    w2aug = w2aug.at[:NUM_HIDDENS, :NUM_OUTPUTS].set(w2)
    w2aug = w2aug.at[NUM_HIDDENS, :NUM_OUTPUTS].set(b2)
    return jnp.stack([w1aug, w2aug])


def classification_forward(x, params):
    """x: (B, NUM_INPUTS) float32, params: (2, PAD, PAD) from pack_params."""
    B = x.shape[0]
    # Lane-dense augmented input: [x | 1 | 0 ... 0]. Under jit this tiny pad
    # fuses with the producer of x.
    x_aug = jnp.zeros((B, PAD), jnp.float32)
    x_aug = x_aug.at[:, :NUM_INPUTS].set(x)
    x_aug = x_aug.at[:, NUM_INPUTS].set(1.0)

    y_pad = pl.pallas_call(
        _mlp_kernel,
        out_shape=jax.ShapeDtypeStruct((B, PAD), jnp.float32),
        in_specs=[
            pl.BlockSpec(memory_space=pltpu.MemorySpace.VMEM),
            pl.BlockSpec(memory_space=pltpu.MemorySpace.VMEM),
        ],
        out_specs=pl.BlockSpec(memory_space=pltpu.MemorySpace.VMEM),
    )(x_aug, params)
    # TODO(synk): if BATCH ever grows to real sizes, tile the batch axis as a
    # "parallel" grid (weights resident via constant index_map) instead of this
    # single-block call.
    return y_pad[:, :NUM_OUTPUTS]


def init_params(key):
    """Deterministic init mimicking nn.Linear default U[-1/sqrt(in), 1/sqrt(in)]."""
    k1, k2, k3, k4 = jax.random.split(key, 4)
    bound1 = 1.0 / jnp.sqrt(NUM_INPUTS)
    bound2 = 1.0 / jnp.sqrt(NUM_HIDDENS)
    w1 = jax.random.uniform(k1, (NUM_INPUTS, NUM_HIDDENS), jnp.float32, -bound1, bound1)
    b1 = jax.random.uniform(k2, (NUM_HIDDENS,), jnp.float32, -bound1, bound1)
    w2 = jax.random.uniform(k3, (NUM_HIDDENS, NUM_OUTPUTS), jnp.float32, -bound2, bound2)
    b2 = jax.random.uniform(k4, (NUM_OUTPUTS,), jnp.float32, -bound2, bound2)
    return w1, b1, w2, b2


if __name__ == "__main__":
    key = jax.random.PRNGKey(0)
    kx, kp = jax.random.split(key)
    x = jax.random.normal(kx, (BATCH, NUM_INPUTS), jnp.float32)
    w1, b1, w2, b2 = init_params(kp)

    params = pack_params(w1, b1, w2, b2)   # one-time packing (init-time cost)

    fwd = jax.jit(classification_forward)
    out = jax.block_until_ready(fwd(x, params))

    # Reference check in plain JAX (original, unpacked parameters).
    h_ref = jnp.maximum(x @ w1 + b1[None, :], 0.0)
    y_ref = jax.nn.sigmoid(h_ref @ w2 + b2[None, :])
    assert out.shape == (BATCH, NUM_OUTPUTS)
    assert jnp.allclose(out, y_ref, atol=1e-5, rtol=1e-5)

    print("KERNEL_OK")
</pallas_src>

<mosaic_0001>
module attributes {stable_mosaic.version = 11 : i64} {
  func.func @_mlp_kernel(%arg0: memref<8x128xf32, #tpu.memory_space<vmem>>, %arg1: memref<2x128x128xf32, #tpu.memory_space<vmem>>, %arg2: memref<8x128xf32, #tpu.memory_space<vmem>>) attributes {dimension_semantics = [], scalar_prefetch = 0 : i64, scratch_operands = 0 : i64, tpu.core_type = #tpu.core_type<tc>} {
    %c0 = arith.constant 0 : index
    %c0_0 = arith.constant 0 : index
    %0 = vector.load %arg0[%c0, %c0_0] : memref<8x128xf32, #tpu.memory_space<vmem>>, vector<8x128xf32>
    %c0_1 = arith.constant 0 : index
    %c0_2 = arith.constant 0 : index
    %c0_3 = arith.constant 0 : index
    %1 = vector.load %arg1[%c0_1, %c0_2, %c0_3] : memref<2x128x128xf32, #tpu.memory_space<vmem>>, vector<1x128x128xf32>
    %2 = vector.shape_cast %1 : vector<1x128x128xf32> to vector<128x128xf32>
    %cst = arith.constant dense<0.000000e+00> : vector<8x128xf32>
    %3 = tpu.matmul %0, %2, %cst {dimension_numbers = #tpu.dot_dimension_numbers<[1], [0], [0], [1], [0, 0, 1, 1], [], []>} : vector<8x128xf32>, vector<128x128xf32>, vector<8x128xf32> -> vector<8x128xf32>
    %cst_4 = arith.constant 0.000000e+00 : f32
    %4 = vector.broadcast %cst_4 : f32 to vector<8x128xf32>
    %5 = arith.maximumf %3, %4 : vector<8x128xf32>
    %c1 = arith.constant 1 : index
    %c0_5 = arith.constant 0 : index
    %c0_6 = arith.constant 0 : index
    %6 = vector.load %arg1[%c1, %c0_5, %c0_6] : memref<2x128x128xf32, #tpu.memory_space<vmem>>, vector<1x128x128xf32>
    %7 = vector.shape_cast %6 : vector<1x128x128xf32> to vector<128x128xf32>
    %cst_7 = arith.constant dense<0.000000e+00> : vector<8x128xf32>
    %8 = tpu.matmul %5, %7, %cst_7 {dimension_numbers = #tpu.dot_dimension_numbers<[1], [0], [0], [1], [0, 0, 1, 1], [], []>} : vector<8x128xf32>, vector<128x128xf32>, vector<8x128xf32> -> vector<8x128xf32>
    %9 = arith.negf %8 : vector<8x128xf32>
    %10 = math.exp %9 : vector<8x128xf32>
    %cst_8 = arith.constant 1.000000e+00 : f32
    %11 = vector.broadcast %cst_8 : f32 to vector<8x128xf32>
    %12 = arith.addf %11, %10 : vector<8x128xf32>
    %13 = arith.divf %11, %12 : vector<8x128xf32>
    %c0_9 = arith.constant 0 : index
    %c0_10 = arith.constant 0 : index
    %14 = vector.load %arg2[%c0_9, %c0_10] : memref<8x128xf32, #tpu.memory_space<vmem>>, vector<8x128xf32>
    tpu.vector_store %arg2[%c0_9, %c0_10], %13 {strides = array<i32>} : memref<8x128xf32, #tpu.memory_space<vmem>>, vector<8x128xf32>,
    return
  }
}

</mosaic_0001>

<bundles_post_ra>
// kernel: classification_forward.1
= control target key start
LH: loop header
LB: loop body
LE: loop exit
PB: predicated region body
PF: predicated region fallthrough
CT: control target
= control target key end

     0   :  { %7 = vsyncpa [#allocation3], 0  ;;  %s399_s9 = smov [#allocation2]   ;;  %s454_s0 = inlined_call_operand.vmem [shape: f32[8,128], index: 0, kind: input, shape index: {}]   ;;  %s455_s1 = inlined_call_operand.hbm [shape: f32[2,128,128], index: 1, kind: input, shape index: {}]   ;;  %s456_s2 = inlined_call_operand.vmem [shape: f32[8,128], index: 2, kind: output, shape index: {}]  }
   0x1   :  { %s15_s10 = sshll.u32 %s399_s9, 4  ;;  %s375_s13 = scalar_lea.hbm %s455_s1, 4096  ;;  %s16_s10 = int_to_ptr.vmem [resolvable:$true] %s15_s10 }
   0x2   :  { %p376_p0 = scmp.ne.s32.totalorder %s455_s1, %s375_s13  ;;  %p379_p1 = scmp.lt.u32.totalorder %s375_s13, %s455_s1 }
   0x4   :  { %p381_p2 = pnand %p379_p1, %p376_p0 }
   0x6   :  { %384 = shalt.err (!%p381_p2)
}
   0x7   :  { %s385_s18 = scalar_lea.vmem %s16_s10, 4096  ;;  %p390_p4 = scmp.lt.s32.totalorder %s16_s10, %s16_s10 }
   0x8   :  { %p386_p3 = scmp.ne.s32.totalorder %s16_s10, %s385_s18  ;;  %p391_p5 = scmp.lt.s32.totalorder %s385_s18, %s385_s18 }
   0xa   :  { %p392_p6 = por %p391_p5, %p390_p4 }
   0xc   :  { %p393_p7 = pnand %p392_p6, %p386_p3 }
   0xe   :  { %396 = shalt.err (!%p393_p7)
}
   0xf   :  { %s400_s19 = smov 128   ;;  %s401_s20 = smov 8  }
  0x10   :  { %21 = dma.hbm_to_vmem [thread:$0]  %s455_s1, 4096, %s16_s10, [#allocation3], %s400_s19, %s400_s19, %s401_s20  }
  0x11   :  { %397 = dma.done.wait [#allocation3], 4096  }
  0x12   :  { %398 = vsyncadd [#allocation3], 4294963200  ;;  %v402_v0 = vmov 0.0|0.0   ;;  %vm403_vm0 = vmmov 0   ;;  %v404_v1 = vmov 0.0   ;;  %v26_v2 = vld [vmem:[#allocation2] sm:$0xff] }
  0x13   :  { %317 = vmatprep.subr.bf16.mxu0 %v402_v0  ;;  %279 = vmatprep.mubr.msk.f32.mxu0 %vm403_vm0, %v404_v1  ;;  %v27_v3 = vld [vmem:[#allocation2 + $0x8] sm:$0xff]  ;;  %v28_v4 = vld [vmem:[#allocation2 + $0x10] sm:$0xff]  ;;  %v29_v6 = vld [vmem:[#allocation2 + $0x18] sm:$0xff] }
  0x14   :  { %341 = vmatprep.subr.bf16.mxu1 %v402_v0  ;;  %314 = vmatprep.mubr.msk.f32.mxu1 %vm403_vm0, %v404_v1  ;;  %v318_v5 = vpack.c.bf16 %v27_v3, %v26_v2  ;;  %v321_v7 = vpack.c.bf16 %v29_v6, %v28_v4  ;;  %v30_v8 = vld [vmem:[#allocation2 + $0x20] sm:$0xff]  ;;  %v31_v9 = vld [vmem:[#allocation2 + $0x28] sm:$0xff]  ;;  %v116_v12 = vld [vmem:[#allocation2 + $0x90] sm:$0xff] }
  0x15   :  { %v114_v10 = vld [vmem:[#allocation2 + $0x80] sm:$0xff]  ;;  %v115_v11 = vld [vmem:[#allocation2 + $0x88] sm:$0xff]  ;;  %v117_v13 = vld [vmem:[#allocation2 + $0x98] sm:$0xff]  ;;  %v324_v14 = vpack.c.bf16 %v31_v9, %v30_v8 }
  0x16   :  { %319 = vmatpush3.bf16.msra.mxu0 %v318_v5  ;;  %v342_v15 = vpack.c.bf16 %v115_v11, %v114_v10  ;;  %v32_v16 = vld [vmem:[#allocation2 + $0x30] sm:$0xff]  ;;  %v33_v17 = vld [vmem:[#allocation2 + $0x38] sm:$0xff]  ;;  %v345_v18 = vpack.c.bf16 %v117_v13, %v116_v12  ;;  %v118_v19 = vld [vmem:[#allocation2 + $0xa0] sm:$0xff] }
  0x17   :  { %320 = vmatprep.subr.bf16.mxu0 %v402_v0  ;;  %v119_v20 = vld [vmem:[#allocation2 + $0xa8] sm:$0xff]  ;;  %v327_v21 = vpack.c.bf16 %v33_v17, %v32_v16  ;;  %v34_v22 = vld [vmem:[#allocation2 + $0x40] sm:$0xff]  ;;  %v120_v25 = vld [vmem:[#allocation2 + $0xb0] sm:$0xff] }
  0x18   :  { %343 = vmatpush3.bf16.msra.mxu1 %v342_v15  ;;  %v35_v23 = vld [vmem:[#allocation2 + $0x48] sm:$0xff]  ;;  %v348_v24 = vpack.c.bf16 %v119_v20, %v118_v19  ;;  %v121_v26 = vld [vmem:[#allocation2 + $0xb8] sm:$0xff]  ;;  %v36_v28 = vld [vmem:[#allocation2 + $0x50] sm:$0xff] }
  0x19   :  { %344 = vmatprep.subr.bf16.mxu1 %v402_v0  ;;  %v330_v27 = vpack.c.bf16 %v35_v23, %v34_v22  ;;  %v37_v29 = vld [vmem:[#allocation2 + $0x58] sm:$0xff]  ;;  %v351_v30 = vpack.c.bf16 %v121_v26, %v120_v25  ;;  %v122_v31 = vld [vmem:[#allocation2 + $0xc0] sm:$0xff]  ;;  %v123_v32 = vld [vmem:[#allocation2 + $0xc8] sm:$0xff] }
  0x1a   :  { %322 = vmatpush3.bf16.msra.mxu0 %v321_v7  ;;  %v333_v33 = vpack.c.bf16 %v37_v29, %v36_v28  ;;  %v38_v34 = vld [vmem:[#allocation2 + $0x60] sm:$0xff]  ;;  %v39_v35 = vld [vmem:[#allocation2 + $0x68] sm:$0xff]  ;;  %v354_v36 = vpack.c.bf16 %v123_v32, %v122_v31  ;;  %v124_v37 = vld [vmem:[#allocation2 + $0xd0] sm:$0xff] }
  0x1b   :  { %323 = vmatprep.subr.bf16.mxu0 %v402_v0  ;;  %v125_v38 = vld [vmem:[#allocation2 + $0xd8] sm:$0xff]  ;;  %v336_v39 = vpack.c.bf16 %v39_v35, %v38_v34  ;;  %v40_v40 = vld [vmem:[#allocation2 + $0x70] sm:$0xff]  ;;  %v126_v43 = vld [vmem:[#allocation2 + $0xe0] sm:$0xff] }
  0x1c   :  { %346 = vmatpush3.bf16.msra.mxu1 %v345_v18  ;;  %v41_v41 = vld [vmem:[#allocation2 + $0x78] sm:$0xff]  ;;  %v357_v42 = vpack.c.bf16 %v125_v38, %v124_v37  ;;  %v127_v44 = vld [vmem:[#allocation2 + $0xe8] sm:$0xff]  ;;  %v25_v47 = vld [vmem:[%s454_s0] sm:$0xff] }
  0x1d   :  { %347 = vmatprep.subr.bf16.mxu1 %v402_v0  ;;  %v339_v45 = vpack.c.bf16 %v41_v41, %v40_v40  ;;  %v360_v46 = vpack.c.bf16 %v127_v44, %v126_v43  ;;  %v128_v48 = vld [vmem:[#allocation2 + $0xf0] sm:$0xff]  ;;  %v129_v49 = vld [vmem:[#allocation2 + $0xf8] sm:$0xff] }
  0x1e   :  { %325 = vmatpush3.bf16.msra.mxu0 %v324_v14  ;;  %v363_v50 = vpack.c.bf16 %v129_v49, %v128_v48 }
  0x1f   :  { %326 = vmatprep.subr.bf16.mxu0 %v402_v0 }
  0x20   :  { %349 = vmatpush3.bf16.msra.mxu1 %v348_v24 }
  0x21   :  { %350 = vmatprep.subr.bf16.mxu1 %v402_v0 }
  0x22   :  { %328 = vmatpush3.bf16.msra.mxu0 %v327_v21 }
  0x23   :  { %329 = vmatprep.subr.bf16.mxu0 %v402_v0 }
  0x24   :  { %352 = vmatpush3.bf16.msra.mxu1 %v351_v30 }
  0x25   :  { %353 = vmatprep.subr.bf16.mxu1 %v402_v0 }
  0x26   :  { %331 = vmatpush3.bf16.msra.mxu0 %v330_v27 }
  0x27   :  { %332 = vmatprep.subr.bf16.mxu0 %v402_v0 }
  0x28   :  { %355 = vmatpush3.bf16.msra.mxu1 %v354_v36 }
  0x29   :  { %356 = vmatprep.subr.bf16.mxu1 %v402_v0 }
  0x2a   :  { %334 = vmatpush3.bf16.msra.mxu0 %v333_v33 }
  0x2b   :  { %335 = vmatprep.subr.bf16.mxu0 %v402_v0 }
  0x2c   :  { %358 = vmatpush3.bf16.msra.mxu1 %v357_v42 }
  0x2d   :  { %359 = vmatprep.subr.bf16.mxu1 %v402_v0 }
  0x2e   :  { %337 = vmatpush3.bf16.msra.mxu0 %v336_v39 }
  0x2f   :  { %338 = vmatprep.subr.bf16.mxu0 %v402_v0 }
  0x30   :  { %361 = vmatpush3.bf16.msra.mxu1 %v360_v46 }
  0x31   :  { %362 = vmatprep.subr.bf16.mxu1 %v402_v0 }
  0x32   :  { %340 = vmatpush3.bf16.msra.mxu0 %v339_v45 }
  0x34   :  { %364 = vmatpush3.bf16.msra.mxu1 %v363_v50 }
  0x35   :  { %280 = vmatmul.mubr.f32.vlgmr.msra.gmra.mrb[0].mxu0 %v25_v47 }
 0x108   :  { %v108_v51 = vpop.f32.mrb[0].mxu0 }
 0x109   :  { %v112_v52 = vmax.f32 %v108_v51, 0.0  ;;  %v281_v53 = vpop.f32.mrb[1].mxu0 }
 0x10b   :  { %315 = vmatmul.mubr.f32.vlgmr.msra.gmra.mrb[0].mxu1 %v112_v52 }
 0x1de   :  { %v196_v54 = vpop.f32.mrb[0].mxu1 }
 0x1df   :  { %v212_v55 = vmul.f32 -1.442695, %v196_v54  ;;  %v316_v56 = vpop.f32.mrb[1].mxu1 }
 0x1e1   :  { %371 = vpow2.f32 %v212_v55 }
 0x1eb   :  { %v372_v57 = vpop.eup %371 }
 0x1ec   :  { %v203_v58 = vadd.f32 1.0, %v372_v57 }
 0x1ee   :  { %373 = vrcp.f32 %v203_v58 }
 0x1f8   :  { %v374_v59 = vpop.eup %373 }
 0x1f9   :  { %206 = vst [vmem:[%s456_s2] sm:$0xff] %v374_v59 }
 0x1fa   :  { %211 = vsyncpa [#allocation3], 1 }

</bundles_post_ra>
